<compile_context>
chip_gen: v5e
topology: v5e:2x2
jax: 0.10.0
libtpu: 0.0.40
codegen_flags: <defaults>
</compile_context>

<pallas_src>
import jax
import jax.numpy as jnp
from jax.experimental import pallas as pl
from jax.experimental.pallas import tpu as pltpu


def _copy_kernel(x_ref, o_ref):
    o_ref[...] = x_ref[...]


# minimum sublane multiple per element size (f32/bf16/int8) for tiled blocks
_SUBLANE_MULT = {1: 32, 2: 16, 4: 8, 8: 8}


def _row_tile(M, L, itemsize, vmem_block_budget=4 << 20):
    """Rows per block: full extent if it fits the budget, else sublane-aligned."""
    if M * L * itemsize <= vmem_block_budget:
        return M                      # full-extent block: exempt from (8,128)
    mult = _SUBLANE_MULT.get(itemsize, 8)
    rows = (vmem_block_budget // (L * itemsize)) // mult * mult
    rows = max(mult, rows)
    return min(rows, M)


def img_concat(x):
    """JAX/Pallas equivalent of imgConcat.forward."""
    if x.ndim != 5:
        return x                      # module passes non-5-D inputs through
    B, C, D, H, W = x.shape
    M, L = B * C * D, H * W

    tm = _row_tile(M, L, x.dtype.itemsize)
    grid = (pl.cdiv(M, tm),)

    out2d = pl.pallas_call(
        _copy_kernel,
        out_shape=jax.ShapeDtypeStruct((M, L), x.dtype),
        grid_spec=pltpu.PrefetchScalarGridSpec(
            num_scalar_prefetch=0,
            grid=grid,
            in_specs=[pl.BlockSpec((tm, L), lambda i: (i, 0))],
            out_specs=pl.BlockSpec((tm, L), lambda i: (i, 0)),
        ),
        compiler_params=pltpu.CompilerParams(
            dimension_semantics=("parallel",)),
    )(x.reshape(M, L))                # contiguous row-major: metadata-only view

    return out2d.reshape(B, C * D, H, W)


if __name__ == "__main__":
    key = jax.random.PRNGKey(0)
    # 5-D input matching the module's intended use:
    # (batch, channels, image_nums, H, W)
    x = jax.random.normal(key, (2, 3, 2, 16, 16), jnp.float32)

    y = jax.block_until_ready(img_concat(x))
    assert y.shape == (2, 6, 16, 16)
    ref = x.reshape(2, -1, 16, 16)
    assert bool(jnp.all(y == ref))
    assert bool(jnp.all(jnp.isfinite(y)))

    # non-5-D path: module returns the input unchanged
    x4 = jax.random.normal(key, (2, 6, 16, 16), jnp.float32)
    y4 = jax.block_until_ready(img_concat(x4))
    assert y4.shape == x4.shape
    assert bool(jnp.all(y4 == x4))

    print("KERNEL_OK")
</pallas_src>

<mosaic_0001>
module attributes {stable_mosaic.version = 11 : i64} {
  func.func @_copy_kernel(%arg0: i32, %arg1: memref<12x256xf32, #tpu.memory_space<vmem>>, %arg2: memref<12x256xf32, #tpu.memory_space<vmem>>) attributes {dimension_semantics = [#tpu.dimension_semantics<parallel>], iteration_bounds = array<i64: 1>, scalar_prefetch = 0 : i64, scratch_operands = 0 : i64, tpu.core_type = #tpu.core_type<tc>, window_params = [{transform_indices = @transform_0, window_bounds = array<i64: 12, 256>}, {transform_indices = @transform_1, window_bounds = array<i64: 12, 256>}]} {
    %c0 = arith.constant 0 : index
    %c0_0 = arith.constant 0 : index
    %0 = vector.load %arg1[%c0, %c0_0] : memref<12x256xf32, #tpu.memory_space<vmem>>, vector<12x256xf32>
    %c0_1 = arith.constant 0 : index
    %c0_2 = arith.constant 0 : index
    %1 = vector.load %arg2[%c0_1, %c0_2] : memref<12x256xf32, #tpu.memory_space<vmem>>, vector<12x256xf32>
    tpu.vector_store %arg2[%c0_1, %c0_2], %0 {strides = array<i32>} : memref<12x256xf32, #tpu.memory_space<vmem>>, vector<12x256xf32>,
    return
  }
  func.func @transform_0(%arg0: i32) -> (i32, i32) {
    %c0_i32 = arith.constant 0 : i32
    %c0_i32_0 = arith.constant 0 : i32
    return %arg0, %c0_i32 : i32, i32
  }
  func.func @transform_1(%arg0: i32) -> (i32, i32) {
    %c0_i32 = arith.constant 0 : i32
    %c0_i32_0 = arith.constant 0 : i32
    return %arg0, %c0_i32 : i32, i32
  }
}

</mosaic_0001>

<bundles_post_ra>
// kernel: tpu_custom_call.1
= control target key start
LH: loop header
LB: loop body
LE: loop exit
PB: predicated region body
PF: predicated region fallthrough
CT: control target
= control target key end

     0   :  { %6 = vsyncpa [#allocation3], 0  ;;  %s128_s0 = inlined_call_operand.hbm [shape: f32[12,256], index: 0, kind: input, shape index: {}]   ;;  %s129_s1 = inlined_call_operand.hbm [shape: f32[12,256], index: 1, kind: output, shape index: {}]  }
   0x1   :  { %7 = vsyncpa [#allocation4], 0  ;;  %s12_s8 = sshll.u32 %s128_s0, 4  ;;  %s108_s9 = smov [#allocation2]   ;;  %s13_s8 = int_to_ptr.hbm [resolvable:$true] %s12_s8 }
   0x2   :  { %s14_s10 = sshll.u32 %s108_s9, 4  ;;  %s109_s11 = smov 256   ;;  %s15_s10 = int_to_ptr.vmem [resolvable:$true] %s14_s10 }
   0x3   :  { %s110_s12 = smov 16  }
   0x4   :  { %20 = dma.hbm_to_vmem [thread:$0]  %s13_s8, 512, %s15_s10, [#allocation3], %s109_s11, %s109_s11, %s110_s12  }
   0x5   :  { %104 = dma.done.wait [#allocation3], 512  }
   0x6   :  { %105 = vsyncadd [#allocation3], 4294966784  ;;  %s111_s13 = smov [#allocation5]   ;;  %s39_s17 = sshll.u32 %s129_s1, 4  ;;  %v25_v0 = vld [vmem:[#allocation2] sm:$0xff]  ;;  %v26_v1 = vld [vmem:[#allocation2 + $0x8] sm:$0xff]  ;;  %s40_s17 = int_to_ptr.hbm [resolvable:$true] %s39_s17 }
   0x7   :  { %s37_s14 = sshll.u32 %s111_s13, 4  ;;  %v27_v2 = vld [vmem:[#allocation2 + $0x10] sm:$0xf]  ;;  %29 = vst [vmem:[#allocation5] sm:$0xff] %v25_v0  ;;  %v28_v3 = vld [vmem:[#allocation2 + $0x18] sm:$0xf]  ;;  %s38_s14 = int_to_ptr.vmem [resolvable:$true] %s37_s14 }
   0x8   :  { %30 = vst [vmem:[#allocation5 + $0x8] sm:$0xff] %v26_v1 }
   0x9   :  { %31 = vst [vmem:[#allocation5 + $0x10] sm:$0xf] %v27_v2 }
   0xa   :  { %32 = vst [vmem:[#allocation5 + $0x18] sm:$0xf] %v28_v3 }
   0xb   :  { %45 = dma.vmem_to_hbm [thread:$0]  %s38_s14, 512, %s40_s17, [#allocation4], %s109_s11, %s109_s11, %s110_s12  }
   0xc   :  { %106 = dma.done.wait [#allocation4], 512  }
   0xd   :  { %107 = vsyncadd [#allocation4], 4294966784 }
   0xe   :  { %50 = vsyncpa [#allocation3], 1 }
   0xf   :  { %51 = vsyncpa [#allocation4], 1 }

</bundles_post_ra>
